<compile_context>
chip_gen: v7x
topology: tpu7x:2x2x1
jax: 0.10.0
libtpu: 0.0.40
codegen_flags: <defaults>
</compile_context>

<pallas_src>
import functools

import jax
import jax.numpy as jnp
from jax.experimental import pallas as pl
from jax.experimental.pallas import tpu as pltpu

LANES = 128
SUBLANES = 8
STRIPE_ROWS = 512                        # rows per in-kernel accumulation stripe
BLOCK_BYTES_PER_INPUT = 8 * 1024 * 1024  # ~8 MiB per input per grid step
VMEM_LIMIT_BYTES = 40 * 1024 * 1024      # 2 inputs x 2 bufs x 8 MiB + headroom


def _round_up(x, m):
    return ((x + m - 1) // m) * m


def _sq_log_diff(p, a):
    # Exactly the reference form: (log(p + 1) - log(a + 1)) ** 2.
    # (Assumes inputs > -1, as the loss does.)
    d = jnp.log1p(p) - jnp.log1p(a)
    return d * d


def _rmsle_partial_kernel(p_ref, a_ref, out_ref, *, tile_rows, stripe_rows,
                          valid_rows, needs_mask):
    num_chunks = tile_rows // stripe_rows

    def block_sum(masked):
        def body(c, acc):
            start = c * stripe_rows
            if not isinstance(start, int):
                start = pl.multiple_of(start, stripe_rows)
            p = p_ref[pl.ds(start, stripe_rows), :].astype(jnp.float32)
            a = a_ref[pl.ds(start, stripe_rows), :].astype(jnp.float32)
            d2 = _sq_log_diff(p, a)
            if masked:
                # Only the single ragged last block pays this. Masking the
                # squared diff once: garbage (NaN/Inf) computed from the
                # unread edge region is replaced by 0 and never propagates.
                row = jax.lax.broadcasted_iota(
                    jnp.int32, (stripe_rows, LANES), 0)
                grow = pl.program_id(0) * tile_rows + c * stripe_rows + row
                d2 = jnp.where(grow < valid_rows, d2, 0.0)
            # (stripe, 128) -> (stripe//8, 8, 128) is the natural vreg tiling;
            # reducing axis 0 is pure VPU adds into an (8,128) accumulator.
            return acc + jnp.sum(
                d2.reshape(stripe_rows // SUBLANES, SUBLANES, LANES), axis=0)

        acc0 = jnp.zeros((SUBLANES, LANES), jnp.float32)
        if num_chunks == 1:
            return body(0, acc0)
        return jax.lax.fori_loop(0, num_chunks, body, acc0,
                                 unroll=(num_chunks <= 8))

    if needs_mask:
        is_last = pl.program_id(0) == pl.num_programs(0) - 1

        @pl.when(jnp.logical_not(is_last))
        def _():
            out_ref[...] = block_sum(masked=False)

        @pl.when(is_last)
        def _():
            out_ref[...] = block_sum(masked=True)
    else:
        out_ref[...] = block_sum(masked=False)


def rmsle_loss(pred, actual):
    assert pred.shape == actual.shape
    total_n = 1
    for s in pred.shape:
        total_n *= s

    p_flat = pred.reshape(-1)
    a_flat = actual.reshape(-1)

    rows = total_n // LANES          # full lane-dense rows handled by kernel
    main_n = rows * LANES
    sum_sq = jnp.float32(0.0)

    if rows > 0:
        # TODO(synk): when total_n % 128 != 0 this slice can materialize an
        # HBM copy of both inputs before the custom call; for strictly
        # non-lane-aligned workloads a pl.ANY + manual make_async_copy variant
        # would stream the original buffers instead. No-op for aligned sizes.
        p2d = p_flat[:main_n].reshape(rows, LANES)
        a2d = a_flat[:main_n].reshape(rows, LANES)

        itemsize = max(jnp.dtype(pred.dtype).itemsize,
                       jnp.dtype(actual.dtype).itemsize)
        budget_rows = max(SUBLANES,
                          BLOCK_BYTES_PER_INPUT // (LANES * itemsize))
        tile_rows = min(budget_rows, _round_up(rows, SUBLANES))
        stripe_rows = min(STRIPE_ROWS, tile_rows)
        tile_rows = _round_up(tile_rows, stripe_rows)

        num_blocks = pl.cdiv(rows, tile_rows)
        needs_mask = (rows % tile_rows) != 0

        kernel = functools.partial(
            _rmsle_partial_kernel,
            tile_rows=tile_rows,
            stripe_rows=stripe_rows,
            valid_rows=rows,
            needs_mask=needs_mask,
        )

        bytes_in = main_n * (jnp.dtype(pred.dtype).itemsize
                             + jnp.dtype(actual.dtype).itemsize)
        cost = pl.CostEstimate(
            flops=4 * main_n,
            transcendentals=2 * main_n,
            bytes_accessed=bytes_in + num_blocks * SUBLANES * LANES * 4,
        )

        partials = pl.pallas_call(
            kernel,
            out_shape=jax.ShapeDtypeStruct((num_blocks * SUBLANES, LANES),
                                           jnp.float32),
            grid=(num_blocks,),
            in_specs=[
                pl.BlockSpec((tile_rows, LANES), lambda i: (i, 0)),
                pl.BlockSpec((tile_rows, LANES), lambda i: (i, 0)),
            ],
            # Each grid step owns its own (8, 128) output slab -> no shared
            # accumulator, safe to shard across both v7x TensorCores.
            out_specs=pl.BlockSpec((SUBLANES, LANES), lambda i: (i, 0)),
            compiler_params=pltpu.CompilerParams(
                dimension_semantics=("parallel",),
                vmem_limit_bytes=VMEM_LIMIT_BYTES,
            ),
            cost_estimate=cost,
        )(p2d, a2d)
        sum_sq = sum_sq + jnp.sum(partials)

    if main_n < total_n:
        # Sub-128-element ragged tail: handled in plain JAX (tiny) instead of
        # padding / copying the whole flattened tensor.
        tp = p_flat[main_n:].astype(jnp.float32)
        ta = a_flat[main_n:].astype(jnp.float32)
        sum_sq = sum_sq + jnp.sum(_sq_log_diff(tp, ta))

    return jnp.sqrt(sum_sq / jnp.float32(total_n))


if __name__ == "__main__":
    key = jax.random.PRNGKey(0)
    k1, k2 = jax.random.split(key)
    # Small NCHW-like shapes (positive values so log(x+1) is well-defined,
    # as the loss assumes).
    shape = (2, 4, 16, 16)
    pred = jax.random.uniform(k1, shape, dtype=jnp.float32) * 5.0
    actual = jax.random.uniform(k2, shape, dtype=jnp.float32) * 5.0

    loss = jax.block_until_ready(rmsle_loss(pred, actual))

    # Reference check in plain JAX (matches the PyTorch module).
    ref = jnp.sqrt(jnp.mean((jnp.log(pred + 1.0) - jnp.log(actual + 1.0)) ** 2))
    assert jnp.allclose(loss, ref, rtol=1e-5, atol=1e-6), (loss, ref)

    print("KERNEL_OK")
</pallas_src>

<mosaic_0001>
module attributes {stable_mosaic.version = 11 : i64} {
  func.func @_rmsle_partial_kernel(%arg0: i32, %arg1: memref<16x128xf32, #tpu.memory_space<vmem>>, %arg2: memref<16x128xf32, #tpu.memory_space<vmem>>, %arg3: memref<8x128xf32, #tpu.memory_space<vmem>>) attributes {dimension_semantics = [#tpu.dimension_semantics<parallel>], iteration_bounds = array<i64: 1>, scalar_prefetch = 0 : i64, scratch_operands = 0 : i64, tpu.core_type = #tpu.core_type<tc>, window_params = [{transform_indices = @transform_0, window_bounds = array<i64: 16, 128>}, {transform_indices = @transform_1, window_bounds = array<i64: 16, 128>}, {transform_indices = @transform_2, window_bounds = array<i64: 8, 128>}]} {
    %cst = arith.constant 0.000000e+00 : f32
    %0 = vector.broadcast %cst : f32 to vector<8x128xf32>
    %c0 = arith.constant 0 : index
    %c0_0 = arith.constant 0 : index
    %1 = vector.load %arg1[%c0, %c0_0] : memref<16x128xf32, #tpu.memory_space<vmem>>, vector<16x128xf32>
    %c0_1 = arith.constant 0 : index
    %c0_2 = arith.constant 0 : index
    %2 = vector.load %arg2[%c0_1, %c0_2] : memref<16x128xf32, #tpu.memory_space<vmem>>, vector<16x128xf32>
    %3 = math.log1p %1 : vector<16x128xf32>
    %4 = math.log1p %2 : vector<16x128xf32>
    %5 = arith.subf %3, %4 : vector<16x128xf32>
    %6 = arith.mulf %5, %5 : vector<16x128xf32>
    %7 = vector.shape_cast %6 : vector<16x128xf32> to vector<2x8x128xf32>
    %cst_3 = arith.constant dense<0.000000e+00> : vector<8x128xf32>
    %8 = vector.multi_reduction <add>, %7, %cst_3 [0] : vector<2x8x128xf32> to vector<8x128xf32>
    %9 = arith.addf %0, %8 : vector<8x128xf32>
    %c0_4 = arith.constant 0 : index
    %c0_5 = arith.constant 0 : index
    %10 = vector.load %arg3[%c0_4, %c0_5] : memref<8x128xf32, #tpu.memory_space<vmem>>, vector<8x128xf32>
    tpu.vector_store %arg3[%c0_4, %c0_5], %9 {strides = array<i32>} : memref<8x128xf32, #tpu.memory_space<vmem>>, vector<8x128xf32>,
    return
  }
  func.func @transform_0(%arg0: i32) -> (i32, i32) {
    %c0_i32 = arith.constant 0 : i32
    %c0_i32_0 = arith.constant 0 : i32
    return %arg0, %c0_i32 : i32, i32
  }
  func.func @transform_1(%arg0: i32) -> (i32, i32) {
    %c0_i32 = arith.constant 0 : i32
    %c0_i32_0 = arith.constant 0 : i32
    return %arg0, %c0_i32 : i32, i32
  }
  func.func @transform_2(%arg0: i32) -> (i32, i32) {
    %c0_i32 = arith.constant 0 : i32
    %c0_i32_0 = arith.constant 0 : i32
    return %arg0, %c0_i32 : i32, i32
  }
}

</mosaic_0001>

<bundles_post_ra>
// kernel: tpu_custom_call.1
= control target key start
LH: loop header
LB: loop body
LE: loop exit
PB: predicated region body
PF: predicated region fallthrough
CT: control target
= control target key end

     0   :  { %7 = vsyncpa [#allocation3], 0  ;;  %s250_s0 = inlined_call_operand.hbm [shape: f32[16,128], index: 0, kind: input, shape index: {}]   ;;  %s251_s1 = inlined_call_operand.hbm [shape: f32[16,128], index: 1, kind: input, shape index: {}]   ;;  %s252_s2 = inlined_call_operand.hbm [shape: f32[8,128], index: 2, kind: output, shape index: {}]  }
   0x1   :  { %8 = vsyncpa [#allocation6], 0 }
   0x2   :  { %9 = vsyncpa [#allocation4], 0  ;;  %s188_s9 = smov [#allocation2]   ;;  %s116_s13 = scalar_lea.hbm %s250_s0, 256 }
   0x3   :  { %s15_s10 = sshll.u32 %s188_s9, 4  ;;  %p117_p0 = scmp.ne.s32.totalorder %s250_s0, %s116_s13  ;;  %s16_s10 = int_to_ptr.vmem [resolvable:$true] %s15_s10 }
   0x4   :  { %p120_p1 = scmp.lt.u32.totalorder %s116_s13, %s250_s0 }
   0x6   :  { %p122_p2 = pnand %p120_p1, %p117_p0 }
   0x8   :  { %125 = shalt.err (!%p122_p2)
}
   0x9   :  { %s126_s18 = scalar_lea.vmem %s16_s10, 256  ;;  %p131_p4 = scmp.lt.s32.totalorder %s16_s10, %s16_s10 }
   0xa   :  { %p127_p3 = scmp.ne.s32.totalorder %s16_s10, %s126_s18  ;;  %p132_p5 = scmp.lt.s32.totalorder %s126_s18, %s126_s18 }
   0xc   :  { %p133_p6 = por %p132_p5, %p131_p4 }
   0xe   :  { %p134_p7 = pnand %p133_p6, %p127_p3 }
  0x10   :  { %137 = shalt.err (!%p134_p7)
}
  0x11   :  { %s189_s19 = smov 128   ;;  %s190_s20 = smov 8  }
  0x12   :  { %21 = dma.hbm_to_vmem [thread:$0]  %s250_s0, 256, %s16_s10, [#allocation3], %s189_s19, %s189_s19, %s190_s20  }
  0x13   :  { %s191_s23 = smov [#allocation5]   ;;  %s138_s27 = scalar_lea.hbm %s251_s1, 256 }
  0x14   :  { %s27_s24 = sshll.u32 %s191_s23, 4  ;;  %p139_p8 = scmp.ne.s32.totalorder %s251_s1, %s138_s27  ;;  %s28_s24 = int_to_ptr.vmem [resolvable:$true] %s27_s24 }
  0x15   :  { %p142_p9 = scmp.lt.u32.totalorder %s138_s27, %s251_s1 }
  0x17   :  { %p144_p10 = pnand %p142_p9, %p139_p8 }
  0x19   :  { %147 = shalt.err (!%p144_p10)
}
  0x1a   :  { %s148_s4 = scalar_lea.vmem %s28_s24, 256  ;;  %p153_p12 = scmp.lt.s32.totalorder %s28_s24, %s28_s24 }
  0x1b   :  { %p149_p11 = scmp.ne.s32.totalorder %s28_s24, %s148_s4  ;;  %p154_p13 = scmp.lt.s32.totalorder %s148_s4, %s148_s4 }
  0x1d   :  { %p155_p0 = por %p154_p13, %p153_p12 }
  0x1f   :  { %p156_p1 = pnand %p155_p0, %p149_p11 }
  0x21   :  { %159 = shalt.err (!%p156_p1)
}
  0x22   :  { %33 = dma.hbm_to_vmem [thread:$0]  %s251_s1, 256, %s28_s24, [#allocation6], %s189_s19, %s189_s19, %s190_s20  }
  0x23   :  { %182 = dma.done.wait [#allocation3], 256  }
  0x24   :  { %183 = vsyncadd [#allocation3], 4294967040 }
  0x25   :  { %184 = dma.done.wait [#allocation6], 256  }
  0x26   :  { %185 = vsyncadd [#allocation6], 4294967040  ;;  %v40_v0 = vld [vmem:[#allocation2] sm:$0xff]  ;;  %v41_v1 = vld [vmem:[#allocation2 + $0x8] sm:$0xff]  ;;  %s192_s1 = smov [#allocation7]  }
  0x27   :  { %v42_v2 = vld [vmem:[#allocation5] sm:$0xff]  ;;  %v44_v3 = vadd.f32 1.0, %v40_v0  ;;  %v53_v4 = vadd.f32 1.0, %v41_v1  ;;  %v43_v5 = vld [vmem:[#allocation5 + $0x8] sm:$0xff]  ;;  %v47_v7 = vmul.f32 -0.5, %v40_v0  ;;  %v56_v9 = vmul.f32 -0.5, %v41_v1 }
  0x28   :  { %v62_v6 = vadd.f32 1.0, %v42_v2  ;;  %v71_v8 = vadd.f32 1.0, %v43_v5  ;;  %v65_v10 = vmul.f32 -0.5, %v42_v2  ;;  %v74_v12 = vmul.f32 -0.5, %v43_v5  ;;  %s93_s6 = sshll.u32 %s192_s1, 4  ;;  %s94_s6 = int_to_ptr.vmem [resolvable:$true] %s93_s6 }
  0x29   :  { %108 = vlog2.f32 %v44_v3  ;;  %v48_v11 = vadd.f32 1.0, %v47_v7  ;;  %v50_v13 = vand.u32 2147483647, %v40_v0  ;;  %v57_v14 = vadd.f32 1.0, %v56_v9  ;;  %s160_s7 = scalar_lea.vmem %s94_s6, 128  ;;  %p165_p3 = scmp.lt.s32.totalorder %s94_s6, %s94_s6 }
  0x2a   :  { %110 = vlog2.f32 %v53_v4  ;;  %v66_v15 = vadd.f32 1.0, %v65_v10  ;;  %v59_v16 = vand.u32 2147483647, %v41_v1  ;;  %v68_v17 = vand.u32 2147483647, %v42_v2  ;;  %p161_p2 = scmp.ne.s32.totalorder %s94_s6, %s160_s7  ;;  %p166_p4 = scmp.lt.s32.totalorder %s160_s7, %s160_s7 }
  0x2b   :  { %112 = vlog2.f32 %v62_v6  ;;  %v49_v18 = vmul.f32 %v48_v11, %v40_v0  ;;  %v75_v19 = vadd.f32 1.0, %v74_v12  ;;  %vm232_vm0 = vcmp.lt.f32.partialorder %v50_v13, 0.0004427343 }
  0x2c   :  { %114 = vlog2.f32 %v71_v8  ;;  %v77_v22 = vand.u32 2147483647, %v43_v5  ;;  %v58_v25 = vmul.f32 %v57_v14, %v41_v1  ;;  %v67_v26 = vmul.f32 %v66_v15, %v42_v2  ;;  %p167_p5 = por %p166_p4, %p165_p3 }
  0x2d   :  { %vm60_vm1 = vcmp.lt.f32.partialorder %v59_v16, 0.0004427343  ;;  %vm69_vm2 = vcmp.lt.f32.partialorder %v68_v17, 0.0004427343  ;;  %v76_v31 = vmul.f32 %v75_v19, %v43_v5 }
  0x2e   :  { %vm78_vm3 = vcmp.lt.f32.partialorder %v77_v22, 0.0004427343  ;;  %p168_p6 = pnand %p167_p5, %p161_p2 }
  0x33   :  { %v109_v20 = vpop.eup %108 }
  0x34   :  { %v111_v23 = vpop.eup %110  ;;  %v46_v24 = vmul.f32 0.6931472, %v109_v20 }
  0x35   :  { %v113_v27 = vpop.eup %112  ;;  %v55_v28 = vmul.f32 0.6931472, %v111_v23 }
  0x36   :  { %v52_v29 = vsel %vm232_vm0, %v49_v18, %v46_v24  ;;  %v64_v30 = vmul.f32 0.6931472, %v113_v27  ;;  %v115_v32 = vpop.eup %114 }
  0x37   :  { %v61_v33 = vsel %vm60_vm1, %v58_v25, %v55_v28  ;;  %v73_v35 = vmul.f32 0.6931472, %v115_v32 }
  0x38   :  { %v70_v34 = vsel %vm69_vm2, %v67_v26, %v64_v30 }
  0x39   :  { %v80_v36 = vsub.f32 %v52_v29, %v70_v34  ;;  %v79_v37 = vsel %vm78_vm3, %v76_v31, %v73_v35 }
  0x3a   :  { %v81_v38 = vsub.f32 %v61_v33, %v79_v37 }
  0x3b   :  { %v82_v39 = vmul.f32 %v80_v36, %v80_v36 }
  0x3c   :  { %v83_v40 = vmul.f32 %v81_v38, %v81_v38 }
  0x3e   :  { %v84_v41 = vadd.f32 %v83_v40, %v82_v39 }
  0x40   :  { %86 = vst [vmem:[#allocation7] sm:$0xff] %v84_v41 }
  0x41   :  { %171 = shalt.err (!%p168_p6)
}
  0x42   :  { %s172_s10 = scalar_lea.hbm %s252_s2, 128 }
  0x43   :  { %p173_p7 = scmp.ne.s32.totalorder %s252_s2, %s172_s10  ;;  %p176_p8 = scmp.lt.u32.totalorder %s172_s10, %s252_s2 }
  0x45   :  { %p178_p9 = pnand %p176_p8, %p173_p7 }
  0x47   :  { %181 = shalt.err (!%p178_p9)
}
  0x48   :  { %96 = dma.vmem_to_hbm [thread:$0]  %s94_s6, 128, %s252_s2, [#allocation4]  }
  0x49   :  { %186 = dma.done.wait [#allocation4], 128  }
  0x4a   :  { %187 = vsyncadd [#allocation4], 4294967168 }
  0x4b   :  { %100 = vsyncpa [#allocation3], 1 }
  0x4c   :  { %101 = vsyncpa [#allocation6], 1 }
  0x4d   :  { %102 = vsyncpa [#allocation4], 1 }

</bundles_post_ra>
